<compile_context>
chip_gen: v5e
topology: v5e:2x2
jax: 0.10.0
libtpu: 0.0.40
codegen_flags: <defaults>
</compile_context>

<pallas_src>
from functools import partial
from typing import NamedTuple

import jax
import jax.numpy as jnp
from jax.experimental import pallas as pl
from jax.experimental.pallas import tpu as pltpu


def _round_up(n: int, m: int) -> int:
    return ((n + m - 1) // m) * m


class FusedMeta(NamedTuple):
    D: int        # input_dim
    H: int        # hidden_dim
    G: int        # output_dim (number of parallel networks)
    Lh: int       # num hidden->hidden layers (num_layers - 1)
    GH: int       # G * H (fused lane width of activations)
    LW: int       # lane-padded width of the packed slabs (>= max(GH, 128))
    D_pad: int    # sublane-padded row count of the first-layer weight block


def _fused_mlp_kernel(x_ref, w_ref, b_ref, o_ref, *, D, GH, LW, Lh, D_pad):
    """One batch tile of the fused forward pass for all G sub-MLPs.

    x_ref: (TB, D)               input tile
    w_ref: (D_pad + (Lh+1)*GH, LW)  packed weight slab:
            rows [0, D)                      : first layer   (D, GH)   [lane-padded]
            rows [D_pad + l*GH, +GH) l<Lh    : hidden layer l (GH, GH) block-diagonal
            rows [D_pad + Lh*GH, +GH)        : output proj    (GH, LW) block-structured
    b_ref: (Lh+2, LW)            packed bias slab (row 0: b1, rows 1..Lh: hidden, last: out)
    o_ref: (TB, LW)              lane-dense output slab; columns [0, G) are the result
    """
    x = x_ref[...]

    # First layer: (TB, D) @ (D, GH)
    h = jnp.dot(x, w_ref[0:D, 0:GH], preferred_element_type=jnp.float32)
    h = jnp.maximum(h + b_ref[0:1, 0:GH], 0.0)

    # Hidden layers: block-diagonal (GH, GH) passes. Static unroll (Lh is small).
    # TODO(synk): switch to lax.fori_loop(..., unroll=True) only if num_layers grows
    # beyond ~8 and vreg pressure appears.
    off = D_pad
    for l in range(Lh):
        h = jnp.dot(h, w_ref[off:off + GH, 0:GH], preferred_element_type=jnp.float32)
        h = jnp.maximum(h + b_ref[1 + l:2 + l, 0:GH], 0.0)
        off += GH

    # Output projection: (TB, GH) @ (GH, LW) -> lane-dense padded output slab.
    out = jnp.dot(h, w_ref[off:off + GH, :], preferred_element_type=jnp.float32)
    o_ref[...] = (out + b_ref[Lh + 1:Lh + 2, :]).astype(o_ref.dtype)


def fuse_params(params):
    """One-time fusion of per-network weights into two packed, lane-padded slabs."""
    w1, b1, wh, bh, wo, bo = (
        params["w1"], params["b1"], params["wh"],
        params["bh"], params["wo"], params["bo"],
    )
    G, D, H = w1.shape
    Lh = wh.shape[1]
    GH = G * H
    LW = max(_round_up(GH, 128), 128)      # lane-dense slab width
    D_pad = _round_up(D, 8)                # keep later row slices sublane-aligned
    eye = jnp.eye(G, dtype=w1.dtype)

    def pad_lanes(a):
        return jnp.pad(a, ((0, 0), (0, LW - a.shape[1])))

    # First layer: w1f[d, g*H + h] = w1[g, d, h]
    w1f = jnp.transpose(w1, (1, 0, 2)).reshape(D, GH)
    w1f = jnp.pad(pad_lanes(w1f), ((0, D_pad - D), (0, 0)))          # (D_pad, LW)

    # Block-diagonal hidden weights: whf[l, g*H+i, k*H+j] = wh[g, l, i, j] * (g == k)
    whf = jnp.einsum("gk,glij->lgikj", eye, wh).reshape(Lh * GH, GH)
    whf = pad_lanes(whf)                                             # (Lh*GH, LW)

    # Output projection: wof[g*H+h, k] = wo[g, h, 0] * (g == k), lane-padded to LW.
    wof = (eye[:, None, :] * wo[:, :, 0][:, :, None]).reshape(GH, G)
    wof = pad_lanes(wof)                                             # (GH, LW)

    w_packed = jnp.concatenate([w1f, whf, wof], axis=0)              # (D_pad+(Lh+1)*GH, LW)

    b1f = pad_lanes(b1.reshape(1, GH))                               # (1, LW)
    bhf = pad_lanes(jnp.transpose(bh, (1, 0, 2, 3)).reshape(Lh, GH)) # (Lh, LW)
    bof = pad_lanes(bo.reshape(1, G))                                # (1, LW)
    b_packed = jnp.concatenate([b1f, bhf, bof], axis=0)              # (Lh+2, LW)

    meta = FusedMeta(D=D, H=H, G=G, Lh=Lh, GH=GH, LW=LW, D_pad=D_pad)
    return {"w": w_packed, "b": b_packed}, meta


def make_forward(meta: FusedMeta, batch_tile: int = 256):
    """Build a jitted forward pass for fixed network dimensions."""
    D, G, GH, LW, Lh, D_pad = meta.D, meta.G, meta.GH, meta.LW, meta.Lh, meta.D_pad
    kernel = partial(_fused_mlp_kernel, D=D, GH=GH, LW=LW, Lh=Lh, D_pad=D_pad)

    @jax.jit
    def forward(x, w_packed, b_packed):
        B = x.shape[0]
        TB = min(max(_round_up(B, 8), 8), batch_tile)
        Bp = _round_up(B, TB)
        if Bp != B:
            x = jnp.pad(x, ((0, Bp - B), (0, 0)))

        out = pl.pallas_call(
            kernel,
            out_shape=jax.ShapeDtypeStruct((Bp, LW), jnp.float32),
            grid=(Bp // TB,),
            in_specs=[
                # x: blocked on batch
                pl.BlockSpec((TB, D), lambda i: (i, 0)),
                # weights / biases: constant index_map -> fetched once, VMEM-resident
                pl.BlockSpec(w_packed.shape, lambda i: (0, 0)),
                pl.BlockSpec(b_packed.shape, lambda i: (0, 0)),
            ],
            out_specs=pl.BlockSpec((TB, LW), lambda i: (i, 0)),
            compiler_params=pltpu.CompilerParams(
                dimension_semantics=("parallel",),   # 2x on v7x (2 TCs); no-op v5e/v6e
            ),
        )(x, w_packed, b_packed)

        # Slice the lane-dense slab back to the true [B, G] result.
        return out[:B, :G]

    return forward


def init_params(key, input_dim, hidden_dim, output_dim, num_layers):
    """Deterministic init mimicking nn.Linear's U(-1/sqrt(fan_in), 1/sqrt(fan_in))."""
    def linear(k, fan_in, fan_out):
        kw, kb = jax.random.split(k)
        bound = 1.0 / jnp.sqrt(fan_in)
        w = jax.random.uniform(kw, (fan_in, fan_out), jnp.float32, -bound, bound)
        b = jax.random.uniform(kb, (fan_out,), jnp.float32, -bound, bound)
        return w, b

    w1s, b1s, whs, bhs, wos, bos = [], [], [], [], [], []
    keys = jax.random.split(key, output_dim)
    for g in range(output_dim):
        ks = jax.random.split(keys[g], num_layers + 1)
        w, b = linear(ks[0], input_dim, hidden_dim)
        w1s.append(w); b1s.append(b.reshape(1, hidden_dim))
        hw, hb = [], []
        for l in range(num_layers - 1):
            w, b = linear(ks[1 + l], hidden_dim, hidden_dim)
            hw.append(w); hb.append(b.reshape(1, hidden_dim))
        whs.append(jnp.stack(hw)); bhs.append(jnp.stack(hb))
        w, b = linear(ks[num_layers], hidden_dim, 1)
        wos.append(w); bos.append(b.reshape(1, 1))

    return {
        "w1": jnp.stack(w1s),   # (G, D, H)
        "b1": jnp.stack(b1s),   # (G, 1, H)
        "wh": jnp.stack(whs),   # (G, L-1, H, H)
        "bh": jnp.stack(bhs),   # (G, L-1, 1, H)
        "wo": jnp.stack(wos),   # (G, H, 1)
        "bo": jnp.stack(bos),   # (G, 1, 1)
    }


def reference_forward(x, params):
    """Pure-JAX reference with identical semantics (sanity check)."""
    outs = []
    G = params["w1"].shape[0]
    for g in range(G):
        h = jnp.maximum(x @ params["w1"][g] + params["b1"][g], 0.0)
        for l in range(params["wh"].shape[1]):
            h = jnp.maximum(h @ params["wh"][g, l] + params["bh"][g, l], 0.0)
        outs.append(h @ params["wo"][g] + params["bo"][g])
    return jnp.concatenate(outs, axis=1)


if __name__ == "__main__":
    INPUT_DIM = 16
    HIDDEN_DIM = 32
    OUTPUT_DIM = 4
    NUM_LAYERS = 3
    BATCH = 8

    key = jax.random.PRNGKey(0)
    kx, kp = jax.random.split(key)
    x = jax.random.normal(kx, (BATCH, INPUT_DIM), jnp.float32)
    params = init_params(kp, INPUT_DIM, HIDDEN_DIM, OUTPUT_DIM, NUM_LAYERS)

    fused, meta = fuse_params(params)                 # one-time weight packing/fusion
    fused = jax.block_until_ready(fused)
    forward = make_forward(meta)

    y = forward(x, fused["w"], fused["b"])
    jax.block_until_ready(y)

    y_ref = reference_forward(x, params)
    assert y.shape == (BATCH, OUTPUT_DIM)
    assert jnp.allclose(y, y_ref, atol=1e-5, rtol=1e-5)

    print("KERNEL_OK")
</pallas_src>

<mosaic_0001>
module attributes {stable_mosaic.version = 11 : i64} {
  func.func @_fused_mlp_kernel(%arg0: i32, %arg1: memref<8x16xf32, #tpu.memory_space<vmem>>, %arg2: memref<400x128xf32, #tpu.memory_space<vmem>>, %arg3: memref<4x128xf32, #tpu.memory_space<vmem>>, %arg4: memref<8x128xf32, #tpu.memory_space<vmem>>) attributes {dimension_semantics = [#tpu.dimension_semantics<parallel>], iteration_bounds = array<i64: 1>, scalar_prefetch = 0 : i64, scratch_operands = 0 : i64, tpu.core_type = #tpu.core_type<tc>, window_params = [{transform_indices = @transform_0, window_bounds = array<i64: 8, 16>}, {pipeline_mode = #tpu.pipeline_mode<synchronous>, transform_indices = @transform_1, window_bounds = array<i64: 400, 128>}, {pipeline_mode = #tpu.pipeline_mode<synchronous>, transform_indices = @transform_2, window_bounds = array<i64: 4, 128>}, {transform_indices = @transform_3, window_bounds = array<i64: 8, 128>}]} {
    %c0 = arith.constant 0 : index
    %c0_0 = arith.constant 0 : index
    %0 = vector.load %arg1[%c0, %c0_0] : memref<8x16xf32, #tpu.memory_space<vmem>>, vector<8x16xf32>
    %c0_1 = arith.constant 0 : index
    %c0_2 = arith.constant 0 : index
    %1 = vector.load %arg2[%c0_1, %c0_2] : memref<400x128xf32, #tpu.memory_space<vmem>>, vector<16x128xf32>
    %cst = arith.constant dense<0.000000e+00> : vector<8x128xf32>
    %2 = tpu.matmul %0, %1, %cst {dimension_numbers = #tpu.dot_dimension_numbers<[1], [0], [0], [1], [0, 0, 1, 1], [], []>} : vector<8x16xf32>, vector<16x128xf32>, vector<8x128xf32> -> vector<8x128xf32>
    %c0_3 = arith.constant 0 : index
    %c0_4 = arith.constant 0 : index
    %3 = vector.load %arg3[%c0_3, %c0_4] : memref<4x128xf32, #tpu.memory_space<vmem>>, vector<1x128xf32>
    %4 = vector.broadcast %3 : vector<1x128xf32> to vector<8x128xf32>
    %5 = arith.addf %2, %4 : vector<8x128xf32>
    %cst_5 = arith.constant 0.000000e+00 : f32
    %6 = vector.broadcast %cst_5 : f32 to vector<8x128xf32>
    %7 = arith.maximumf %5, %6 : vector<8x128xf32>
    %c16 = arith.constant 16 : index
    %c0_6 = arith.constant 0 : index
    %8 = vector.load %arg2[%c16, %c0_6] : memref<400x128xf32, #tpu.memory_space<vmem>>, vector<128x128xf32>
    %cst_7 = arith.constant dense<0.000000e+00> : vector<8x128xf32>
    %9 = tpu.matmul %7, %8, %cst_7 {dimension_numbers = #tpu.dot_dimension_numbers<[1], [0], [0], [1], [0, 0, 1, 1], [], []>} : vector<8x128xf32>, vector<128x128xf32>, vector<8x128xf32> -> vector<8x128xf32>
    %c1 = arith.constant 1 : index
    %c0_8 = arith.constant 0 : index
    %10 = vector.load %arg3[%c1, %c0_8] : memref<4x128xf32, #tpu.memory_space<vmem>>, vector<1x128xf32>
    %11 = vector.broadcast %10 : vector<1x128xf32> to vector<8x128xf32>
    %12 = arith.addf %9, %11 : vector<8x128xf32>
    %cst_9 = arith.constant 0.000000e+00 : f32
    %13 = vector.broadcast %cst_9 : f32 to vector<8x128xf32>
    %14 = arith.maximumf %12, %13 : vector<8x128xf32>
    %c144 = arith.constant 144 : index
    %c0_10 = arith.constant 0 : index
    %15 = vector.load %arg2[%c144, %c0_10] : memref<400x128xf32, #tpu.memory_space<vmem>>, vector<128x128xf32>
    %cst_11 = arith.constant dense<0.000000e+00> : vector<8x128xf32>
    %16 = tpu.matmul %14, %15, %cst_11 {dimension_numbers = #tpu.dot_dimension_numbers<[1], [0], [0], [1], [0, 0, 1, 1], [], []>} : vector<8x128xf32>, vector<128x128xf32>, vector<8x128xf32> -> vector<8x128xf32>
    %c2 = arith.constant 2 : index
    %c0_12 = arith.constant 0 : index
    %17 = vector.load %arg3[%c2, %c0_12] : memref<4x128xf32, #tpu.memory_space<vmem>>, vector<1x128xf32>
    %18 = vector.broadcast %17 : vector<1x128xf32> to vector<8x128xf32>
    %19 = arith.addf %16, %18 : vector<8x128xf32>
    %cst_13 = arith.constant 0.000000e+00 : f32
    %20 = vector.broadcast %cst_13 : f32 to vector<8x128xf32>
    %21 = arith.maximumf %19, %20 : vector<8x128xf32>
    %c272 = arith.constant 272 : index
    %c0_14 = arith.constant 0 : index
    %22 = vector.load %arg2[%c272, %c0_14] : memref<400x128xf32, #tpu.memory_space<vmem>>, vector<128x128xf32>
    %cst_15 = arith.constant dense<0.000000e+00> : vector<8x128xf32>
    %23 = tpu.matmul %21, %22, %cst_15 {dimension_numbers = #tpu.dot_dimension_numbers<[1], [0], [0], [1], [0, 0, 1, 1], [], []>} : vector<8x128xf32>, vector<128x128xf32>, vector<8x128xf32> -> vector<8x128xf32>
    %c3 = arith.constant 3 : index
    %c0_16 = arith.constant 0 : index
    %24 = vector.load %arg3[%c3, %c0_16] : memref<4x128xf32, #tpu.memory_space<vmem>>, vector<1x128xf32>
    %25 = vector.broadcast %24 : vector<1x128xf32> to vector<8x128xf32>
    %26 = arith.addf %23, %25 : vector<8x128xf32>
    %c0_17 = arith.constant 0 : index
    %c0_18 = arith.constant 0 : index
    %27 = vector.load %arg4[%c0_17, %c0_18] : memref<8x128xf32, #tpu.memory_space<vmem>>, vector<8x128xf32>
    tpu.vector_store %arg4[%c0_17, %c0_18], %26 {strides = array<i32>} : memref<8x128xf32, #tpu.memory_space<vmem>>, vector<8x128xf32>,
    return
  }
  func.func @transform_0(%arg0: i32) -> (i32, i32) {
    %c0_i32 = arith.constant 0 : i32
    %c0_i32_0 = arith.constant 0 : i32
    return %arg0, %c0_i32 : i32, i32
  }
  func.func @transform_1(%arg0: i32) -> (i32, i32) {
    %c0_i32 = arith.constant 0 : i32
    %c0_i32_0 = arith.constant 0 : i32
    %c0_i32_1 = arith.constant 0 : i32
    return %c0_i32, %c0_i32_0 : i32, i32
  }
  func.func @transform_2(%arg0: i32) -> (i32, i32) {
    %c0_i32 = arith.constant 0 : i32
    %c0_i32_0 = arith.constant 0 : i32
    %c0_i32_1 = arith.constant 0 : i32
    return %c0_i32, %c0_i32_0 : i32, i32
  }
  func.func @transform_3(%arg0: i32) -> (i32, i32) {
    %c0_i32 = arith.constant 0 : i32
    %c0_i32_0 = arith.constant 0 : i32
    return %arg0, %c0_i32 : i32, i32
  }
}

</mosaic_0001>

<bundles_post_ra>
// kernel: forward.1
= control target key start
LH: loop header
LB: loop body
LE: loop exit
PB: predicated region body
PF: predicated region fallthrough
CT: control target
= control target key end

     0   :  { %8 = vsyncpa [#allocation3], 0  ;;  %s333_s0 = inlined_call_operand.hbm [shape: f32[8,16], index: 0, kind: input, shape index: {}]   ;;  %s334_s1 = inlined_call_operand.hbm [shape: f32[400,128], index: 1, kind: input, shape index: {}]   ;;  %s335_s2 = inlined_call_operand.hbm [shape: f32[4,128], index: 2, kind: input, shape index: {}]   ;;  %s336_s3 = inlined_call_operand.vmem [shape: f32[8,128], index: 3, kind: output, shape index: {}]  }
   0x1   :  { %9 = vsyncpa [#allocation5], 0  ;;  %s25_s14 = sshll.u32 %s334_s1, 4  ;;  %s296_s15 = smov [#allocation4]   ;;  %s26_s14 = int_to_ptr.hbm [resolvable:$true] %s25_s14 }
   0x2   :  { %s27_s16 = sshll.u32 %s296_s15, 4  ;;  %s15_s19 = sshll.u32 %s333_s0, 4  ;;  %s28_s16 = int_to_ptr.vmem [resolvable:$true] %s27_s16  ;;  %s16_s19 = int_to_ptr.hbm [resolvable:$true] %s15_s19 }
   0x3   :  { %s297_s20 = smov 128   ;;  %s298_s21 = smov 8  }
   0x4   :  { %33 = dma.hbm_to_vmem [thread:$0]  %s26_s14, 6400, %s28_s16, [#allocation5], %s297_s20, %s297_s20, %s298_s21  }
   0x5   :  { %s299_s22 = smov [#allocation2]   ;;  %s39_s26 = sshll.u32 %s335_s2, 4  ;;  %s40_s26 = int_to_ptr.hbm [resolvable:$true] %s39_s26 }
   0x6   :  { %s17_s23 = sshll.u32 %s299_s22, 4  ;;  %s300_s1 = smov [#allocation6]   ;;  %s18_s23 = int_to_ptr.vmem [resolvable:$true] %s17_s23 }
   0x7   :  { %20 = dma.hbm_to_vmem [thread:$0]  %s16_s19, 128, %s18_s23, [#allocation3]  }
   0x8   :  { %s41_s27 = sshll.u32 %s300_s1, 4  ;;  %s42_s27 = int_to_ptr.vmem [resolvable:$true] %s41_s27 }
   0x9   :  { %44 = dma.hbm_to_vmem [thread:$0]  %s40_s26, 64, %s42_s27, [#allocation5]  }
   0xa   :  { %292 = dma.done.wait [#allocation3], 128  }
   0xb   :  { %293 = vsyncadd [#allocation3], 4294967168 }
   0xc   :  { %294 = dma.done.wait [#allocation5], 6464  }
   0xd   :  { %295 = vsyncadd [#allocation5], 4294960832  ;;  %v59_v0 = vld [vmem:[#allocation4 + $0x8] sm:$0xff]  ;;  %v58_v1 = vld [vmem:[#allocation4] sm:$0xff]  ;;  %vm62_vm0 = vcmask 130048  }
   0xe   :  { %80 = vmatpush.msra.mxu0 %v59_v0  ;;  %v57_v2 = vld [vmem:[#allocation2] sm:$0xff]  ;;  %v102_v3 = vld [vmem:[#allocation4 + $0x88] sm:$0xff]  ;;  %v101_v4 = vld [vmem:[#allocation4 + $0x80] sm:$0xff] }
   0xf   :  { %105 = vmatpush.msra.mxu1 %v102_v3  ;;  %v100_v5 = vld [vmem:[#allocation4 + $0x78] sm:$0xff]  ;;  %v99_v6 = vld [vmem:[#allocation4 + $0x70] sm:$0xff]  ;;  %v98_v7 = vld [vmem:[#allocation4 + $0x68] sm:$0xff] }
  0x10   :  { %81 = vmatpush.msra.mxu0 %v58_v1  ;;  %v97_v8 = vld [vmem:[#allocation4 + $0x60] sm:$0xff]  ;;  %v96_v9 = vld [vmem:[#allocation4 + $0x58] sm:$0xff]  ;;  %v95_v10 = vld [vmem:[#allocation4 + $0x50] sm:$0xff] }
  0x11   :  { %210 = vmatmul.msk.f32.vlgmr.msra.gmra.mxu0 %vm62_vm0, %v57_v2  ;;  %106 = vmatpush.msra.mxu1 %v101_v4  ;;  %v94_v11 = vld [vmem:[#allocation4 + $0x48] sm:$0xff]  ;;  %v93_v12 = vld [vmem:[#allocation4 + $0x40] sm:$0xff]  ;;  %v92_v13 = vld [vmem:[#allocation4 + $0x38] sm:$0xff] }
  0x12   :  { %v91_v14 = vld [vmem:[#allocation4 + $0x30] sm:$0xff]  ;;  %v90_v15 = vld [vmem:[#allocation4 + $0x28] sm:$0xff]  ;;  %v89_v16 = vld [vmem:[#allocation4 + $0x20] sm:$0xff] }
  0x13   :  { %107 = vmatpush.msra.mxu1 %v100_v5  ;;  %v88_v17 = vld [vmem:[#allocation4 + $0x18] sm:$0xff]  ;;  %v87_v18 = vld [vmem:[#allocation4 + $0x10] sm:$0xff]  ;;  %v141_v19 = vld [vmem:[#allocation4 + $0x108] sm:$0xff] }
  0x14   :  { %v140_v20 = vld [vmem:[#allocation4 + $0x100] sm:$0xff]  ;;  %144 = vmatpush.msra.mxu2 %v141_v19  ;;  %v139_v21 = vld [vmem:[#allocation4 + $0xf8] sm:$0xff]  ;;  %v138_v22 = vld [vmem:[#allocation4 + $0xf0] sm:$0xff] }
  0x15   :  { %108 = vmatpush.msra.mxu1 %v99_v6  ;;  %v137_v23 = vld [vmem:[#allocation4 + $0xe8] sm:$0xff]  ;;  %v136_v24 = vld [vmem:[#allocation4 + $0xe0] sm:$0xff]  ;;  %v135_v25 = vld [vmem:[#allocation4 + $0xd8] sm:$0xff] }
  0x16   :  { %145 = vmatpush.msra.mxu2 %v140_v20  ;;  %v134_v26 = vld [vmem:[#allocation4 + $0xd0] sm:$0xff]  ;;  %v133_v27 = vld [vmem:[#allocation4 + $0xc8] sm:$0xff]  ;;  %v132_v28 = vld [vmem:[#allocation4 + $0xc0] sm:$0xff] }
  0x17   :  { %109 = vmatpush.msra.mxu1 %v98_v7  ;;  %v131_v29 = vld [vmem:[#allocation4 + $0xb8] sm:$0xff]  ;;  %v130_v30 = vld [vmem:[#allocation4 + $0xb0] sm:$0xff]  ;;  %v129_v31 = vld [vmem:[#allocation4 + $0xa8] sm:$0xff] }
  0x18   :  { %146 = vmatpush.msra.mxu2 %v139_v21  ;;  %v216_v32 = vld [vmem:[#allocation6] ss:$0 sm:$0xff]  ;;  %v128_v36 = vld [vmem:[#allocation4 + $0xa0] sm:$0xff]  ;;  %v127_v37 = vld [vmem:[#allocation4 + $0x98] sm:$0xff] }
  0x19   :  { %110 = vmatpush.msra.mxu1 %v97_v8  ;;  %v126_v38 = vld [vmem:[#allocation4 + $0x90] sm:$0xff]  ;;  %v180_v39 = vld [vmem:[#allocation4 + $0x188] sm:$0xff]  ;;  %v179_v40 = vld [vmem:[#allocation4 + $0x180] sm:$0xff] }
  0x1a   :  { %147 = vmatpush.msra.mxu2 %v138_v22  ;;  %183 = vmatpush.msra.mxu3 %v180_v39  ;;  %v178_v41 = vld [vmem:[#allocation4 + $0x178] sm:$0xff]  ;;  %v177_v42 = vld [vmem:[#allocation4 + $0x170] sm:$0xff]  ;;  %v176_v43 = vld [vmem:[#allocation4 + $0x168] sm:$0xff] }
  0x1b   :  { %111 = vmatpush.msra.mxu1 %v96_v9  ;;  %v175_v44 = vld [vmem:[#allocation4 + $0x160] sm:$0xff]  ;;  %v174_v45 = vld [vmem:[#allocation4 + $0x158] sm:$0xff]  ;;  %v173_v46 = vld [vmem:[#allocation4 + $0x150] sm:$0xff] }
  0x1c   :  { %148 = vmatpush.msra.mxu2 %v137_v23  ;;  %184 = vmatpush.msra.mxu3 %v179_v40  ;;  %v172_v47 = vld [vmem:[#allocation4 + $0x148] sm:$0xff]  ;;  %v171_v48 = vld [vmem:[#allocation4 + $0x140] sm:$0xff]  ;;  %v170_v49 = vld [vmem:[#allocation4 + $0x138] sm:$0xff] }
  0x1d   :  { %112 = vmatpush.msra.mxu1 %v95_v10  ;;  %v169_v50 = vld [vmem:[#allocation4 + $0x130] sm:$0xff]  ;;  %v168_v51 = vld [vmem:[#allocation4 + $0x128] sm:$0xff]  ;;  %v167_v56 = vld [vmem:[#allocation4 + $0x120] sm:$0xff] }
  0x1e   :  { %149 = vmatpush.msra.mxu2 %v136_v24  ;;  %185 = vmatpush.msra.mxu3 %v178_v41  ;;  %v217_v52 = vld [vmem:[#allocation6 + $0x1] ss:$0 sm:$0xff]  ;;  %v166_v57 = vld [vmem:[#allocation4 + $0x118] sm:$0xff]  ;;  %v218_v59 = vld [vmem:[#allocation6 + $0x2] ss:$0 sm:$0xff] }
  0x1f   :  { %113 = vmatpush.msra.mxu1 %v94_v11  ;;  %v165_v58 = vld [vmem:[#allocation4 + $0x110] sm:$0xff] }
  0x20   :  { %150 = vmatpush.msra.mxu2 %v135_v25  ;;  %186 = vmatpush.msra.mxu3 %v177_v42  ;;  %v219_v63 = vld [vmem:[#allocation6 + $0x3] ss:$0 sm:$0xff] }
  0x21   :  { %114 = vmatpush.msra.mxu1 %v93_v12 }
  0x22   :  { %151 = vmatpush.msra.mxu2 %v134_v26  ;;  %187 = vmatpush.msra.mxu3 %v176_v43 }
  0x23   :  { %115 = vmatpush.msra.mxu1 %v92_v13 }
  0x24   :  { %152 = vmatpush.msra.mxu2 %v133_v27  ;;  %188 = vmatpush.msra.mxu3 %v175_v44 }
  0x25   :  { %116 = vmatpush.msra.mxu1 %v91_v14 }
  0x26   :  { %153 = vmatpush.msra.mxu2 %v132_v28  ;;  %189 = vmatpush.msra.mxu3 %v174_v45 }
  0x27   :  { %117 = vmatpush.msra.mxu1 %v90_v15 }
  0x28   :  { %154 = vmatpush.msra.mxu2 %v131_v29  ;;  %190 = vmatpush.msra.mxu3 %v173_v46 }
  0x29   :  { %118 = vmatpush.msra.mxu1 %v89_v16 }
  0x2a   :  { %155 = vmatpush.msra.mxu2 %v130_v30  ;;  %191 = vmatpush.msra.mxu3 %v172_v47 }
  0x2b   :  { %119 = vmatpush.msra.mxu1 %v88_v17 }
  0x2c   :  { %156 = vmatpush.msra.mxu2 %v129_v31  ;;  %192 = vmatpush.msra.mxu3 %v171_v48 }
  0x2d   :  { %120 = vmatpush.msra.mxu1 %v87_v18 }
  0x2e   :  { %157 = vmatpush.msra.mxu2 %v128_v36  ;;  %193 = vmatpush.msra.mxu3 %v170_v49 }
  0x30   :  { %158 = vmatpush.msra.mxu2 %v127_v37  ;;  %194 = vmatpush.msra.mxu3 %v169_v50 }
  0x32   :  { %159 = vmatpush.msra.mxu2 %v126_v38  ;;  %195 = vmatpush.msra.mxu3 %v168_v51 }
  0x34   :  { %196 = vmatpush.msra.mxu3 %v167_v56 }
  0x36   :  { %197 = vmatpush.msra.mxu3 %v166_v57 }
  0x38   :  { %198 = vmatpush.msra.mxu3 %v165_v58 }
  0x8e   :  { %v83_v33 = vpop.f32.mrf.mxu0 }
  0x8f   :  { %v84_v34 = vadd.f32 %v216_v32, %v83_v33 }
  0x91   :  { %v86_v35 = vmax.f32 %v84_v34, 0.0 }
  0x93   :  { %121 = vmatmul.f32.vlgmr.msra.gmra.mxu1 %v86_v35 }
 0x110   :  { %v122_v53 = vpop.f32.mrf.mxu1 }
 0x111   :  { %v123_v54 = vadd.f32 %v217_v52, %v122_v53 }
 0x113   :  { %v125_v55 = vmax.f32 %v123_v54, 0.0 }
 0x115   :  { %160 = vmatmul.f32.vlgmr.msra.gmra.mxu2 %v125_v55 }
 0x198   :  { %v161_v60 = vpop.f32.mrf.mxu2 }
 0x199   :  { %v162_v61 = vadd.f32 %v218_v59, %v161_v60 }
 0x19b   :  { %v164_v62 = vmax.f32 %v162_v61, 0.0 }
 0x19d   :  { %199 = vmatmul.f32.vlgmr.msra.gmra.mxu3 %v164_v62 }
 0x220   :  { %v200_v0 = vpop.f32.mrf.mxu3 }
 0x221   :  { %v201_v1 = vadd.f32 %v219_v63, %v200_v0 }
 0x223   :  { %203 = vst [vmem:[%s336_s3] sm:$0xff] %v201_v1 }
 0x224   :  { %208 = vsyncpa [#allocation3], 1 }
 0x225   :  { %209 = vsyncpa [#allocation5], 1 }

</bundles_post_ra>
